<compile_context>
chip_gen: v7x
topology: tpu7x:2x2x1
jax: 0.10.0
libtpu: 0.0.40
codegen_flags: <defaults>
</compile_context>

<pallas_src>
import functools

import jax
import jax.numpy as jnp
from jax import lax
from jax.experimental import pallas as pl
from jax.experimental.pallas import tpu as pltpu

EPS = 1e-5
_HI = lax.Precision.HIGHEST   # tiny wrapper matmuls + reference: exact f32


def _stats_kernel(x_ref, sum_ref, gram_ref, *, tm, m_total, needs_mask):
    """Pass 1: accumulate per-channel sum and the C_in x C_in Gram of x."""
    i = pl.program_id(0)

    @pl.when(i == 0)
    def _():
        sum_ref[...] = jnp.zeros_like(sum_ref)
        gram_ref[...] = jnp.zeros_like(gram_ref)

    x = x_ref[...]                                             # (C_in, TM) f32
    if needs_mask:
        col = lax.broadcasted_iota(jnp.int32, x.shape, 1) + i * tm
        x = jnp.where(col < m_total, x, 0.0)

    sum_ref[...] += jnp.sum(x, axis=1, keepdims=True)          # (C_in, 1)
    gram_ref[...] += lax.dot_general(                          # (C_in, C_in)
        x, x, (((1,), (1,)), ((), ())),
        preferred_element_type=jnp.float32)


def _apply_kernel(x_ref, w_ref, b_ref, o_ref):
    """Pass 2: out_tile = W_eff @ x_tile + bias (single K=96 MXU matmul)."""
    o_ref[...] = (
        jnp.dot(w_ref[...], x_ref[...], preferred_element_type=jnp.float32)
        + b_ref[...]
    ).astype(o_ref.dtype)


def fused_forward(x37, x33, w1, g1, b1, w2, g2, b2, *, tm=512):
    """
    x37: (1, C_in, 1, 1)  pre-sigmoid gate (torch layout)
    x33: (N, C_in, H, W)  activations, NCHW
    w1 : (C_mid, C_in)    conv2d13 weight (1x1, squeezed)
    g1, b1: (C_mid,)      batchnorm2d7 affine
    w2 : (C_out, C_mid)   conv2d14 weight (1x1, squeezed)
    g2, b2: (C_out,)      batchnorm2d8 affine
    returns (N, C_out, H, W)
    """
    N, C_in, H, W = x33.shape
    C_mid, _ = w1.shape
    C_out, _ = w2.shape
    M = N * H * W
    f32 = jnp.float32

    # Channels-first flat layout.  For N == 1 (the module's shape) the
    # transpose is a pure reshape (no HBM data movement).
    x_cf = jnp.transpose(x33, (1, 0, 2, 3)).reshape(C_in, M).astype(f32)

    # --- fold sigmoid gate into conv1 weight --------------------------------
    gate = jax.nn.sigmoid(x37.reshape(C_in).astype(f32))        # (C_in,)
    w1f = w1.astype(f32) * gate[None, :]                        # (C_mid, C_in)
    w2f = w2.astype(f32)
    g1f, b1f = g1.astype(f32), b1.astype(f32)
    g2f, b2f = g2.astype(f32), b2.astype(f32)

    # --- tile size -----------------------------------------------------------
    TM = tm if M >= tm else M          # tm is a multiple of 128; else full M
    grid = (pl.cdiv(M, TM),)
    needs_mask = (M % TM) != 0

    # --- pass 1: global sum + Gram of x -------------------------------------
    x_sum, x_gram = pl.pallas_call(
        functools.partial(_stats_kernel, tm=TM, m_total=M,
                          needs_mask=needs_mask),
        out_shape=(jax.ShapeDtypeStruct((C_in, 1), f32),
                   jax.ShapeDtypeStruct((C_in, C_in), f32)),
        grid=grid,
        in_specs=[pl.BlockSpec((C_in, TM), lambda i: (0, i))],
        out_specs=(pl.BlockSpec((C_in, 1), lambda i: (0, 0)),
                   pl.BlockSpec((C_in, C_in), lambda i: (0, 0))),
        compiler_params=pltpu.CompilerParams(
            dimension_semantics=("arbitrary",)),
    )(x_cf)

    # --- tiny XLA glue: analytic BN stats + fold everything into one affine -
    inv_m = jnp.float32(1.0 / M)
    mean_x = x_sum * inv_m                                      # (C_in, 1)
    cov_x = x_gram * inv_m - jnp.dot(mean_x, mean_x.T, precision=_HI)

    # y1 = w1f @ x  (channels-first);  BN1 uses biased batch variance.
    mean1 = jnp.dot(w1f, mean_x, precision=_HI)[:, 0]           # (C_mid,)
    cov1 = jnp.dot(jnp.dot(w1f, cov_x, precision=_HI), w1f.T,
                   precision=_HI)                               # (C_mid, C_mid)
    var1 = jnp.diagonal(cov1)
    d1 = g1f * lax.rsqrt(var1 + EPS)

    # y1n = diag(d1) @ y1 + (b1 - d1*mean1);   y2 = w2 @ y1n = A @ y1 + c2
    A = w2f * d1[None, :]                                       # (C_out, C_mid)
    c2 = jnp.dot(w2f, b1f - d1 * mean1, precision=_HI)          # (C_out,)
    mean2 = jnp.dot(A, mean1, precision=_HI) + c2
    var2 = jnp.sum(jnp.dot(A, cov1, precision=_HI) * A, axis=1)  # diag(A cov1 A^T)
    d2 = g2f * lax.rsqrt(var2 + EPS)

    # out = diag(d2) @ (A @ y1 + c2 - mean2) + b2 = W_eff @ x + bias_eff
    W_eff = jnp.dot(A * d2[:, None], w1f, precision=_HI)        # (C_out, C_in)
    bias_eff = (d2 * (c2 - mean2) + b2f)[:, None]               # (C_out, 1)

    # --- pass 2: out = W_eff @ x + bias, tiled over M, megacore-parallel ----
    out_cf = pl.pallas_call(
        _apply_kernel,
        out_shape=jax.ShapeDtypeStruct((C_out, M), f32),
        grid=grid,
        in_specs=[
            pl.BlockSpec((C_in, TM), lambda i: (0, i)),
            pl.BlockSpec((C_out, C_in), lambda i: (0, 0)),
            pl.BlockSpec((C_out, 1), lambda i: (0, 0)),
        ],
        out_specs=pl.BlockSpec((C_out, TM), lambda i: (0, i)),
        compiler_params=pltpu.CompilerParams(
            dimension_semantics=("parallel",)),
    )(x_cf, W_eff, bias_eff)

    # Channels-first flat -> NCHW (free reshape for N == 1).
    return jnp.transpose(out_cf.reshape(C_out, N, H, W), (1, 0, 2, 3))


def _reference(x37, x33, w1, g1, b1, w2, g2, b2):
    """Pure-JAX f32 reference of the PyTorch forward (training-mode BN)."""
    xs = jax.nn.sigmoid(x37) * x33
    y1 = jnp.einsum("nchw,dc->ndhw", xs, w1, precision=_HI)
    m1 = jnp.mean(y1, axis=(0, 2, 3), keepdims=True)
    v1 = jnp.mean((y1 - m1) ** 2, axis=(0, 2, 3), keepdims=True)
    y1n = (y1 - m1) * lax.rsqrt(v1 + EPS) * g1[None, :, None, None] \
        + b1[None, :, None, None]
    y2 = jnp.einsum("nchw,dc->ndhw", y1n, w2, precision=_HI)
    m2 = jnp.mean(y2, axis=(0, 2, 3), keepdims=True)
    v2 = jnp.mean((y2 - m2) ** 2, axis=(0, 2, 3), keepdims=True)
    return (y2 - m2) * lax.rsqrt(v2 + EPS) * g2[None, :, None, None] \
        + b2[None, :, None, None]


if __name__ == "__main__":
    # Channel sizes fixed by the module (96 -> 24 -> 144); spatial reduced
    # from 56 to 28 to keep the test small while still exercising the tiled
    # path (M = 784 -> 2 tiles of 512, last one partial/masked).
    N, C_IN, C_MID, C_OUT, H, W = 1, 96, 24, 144, 28, 28

    key = jax.random.PRNGKey(0)
    k = jax.random.split(key, 8)

    x33 = jax.random.normal(k[0], (N, C_IN, H, W), dtype=jnp.float32)
    x37 = jax.random.normal(k[1], (1, C_IN, 1, 1), dtype=jnp.float32)

    # torch Conv2d weights (out, in, 1, 1), squeezed to (out, in)
    w1 = 0.05 * jax.random.normal(k[2], (C_MID, C_IN), dtype=jnp.float32)
    w2 = 0.10 * jax.random.normal(k[3], (C_OUT, C_MID), dtype=jnp.float32)

    g1 = 1.0 + 0.1 * jax.random.normal(k[4], (C_MID,), dtype=jnp.float32)
    b1 = 0.1 * jax.random.normal(k[5], (C_MID,), dtype=jnp.float32)
    g2 = 1.0 + 0.1 * jax.random.normal(k[6], (C_OUT,), dtype=jnp.float32)
    b2 = 0.1 * jax.random.normal(k[7], (C_OUT,), dtype=jnp.float32)

    out = fused_forward(x37, x33, w1, g1, b1, w2, g2, b2)
    out = jax.block_until_ready(out)

    ref = _reference(x37, x33, w1, g1, b1, w2, g2, b2)
    assert out.shape == (N, C_OUT, H, W), out.shape
    max_err = float(jnp.max(jnp.abs(out - ref)))
    assert jnp.allclose(out, ref, atol=1e-3, rtol=1e-3), max_err

    print("KERNEL_OK")
</pallas_src>

<mosaic_0001>
module attributes {stable_mosaic.version = 11 : i64} {
  func.func @_stats_kernel(%arg0: i32, %arg1: memref<96x512xf32, #tpu.memory_space<vmem>>, %arg2: memref<96x1xf32, #tpu.memory_space<vmem>>, %arg3: memref<96x96xf32, #tpu.memory_space<vmem>>) attributes {dimension_semantics = [#tpu.dimension_semantics<arbitrary>], iteration_bounds = array<i64: 2>, scalar_prefetch = 0 : i64, scratch_operands = 0 : i64, tpu.core_type = #tpu.core_type<tc>, window_params = [{transform_indices = @transform_0, window_bounds = array<i64: 96, 512>}, {pipeline_mode = #tpu.pipeline_mode<synchronous>, transform_indices = @transform_1, window_bounds = array<i64: 96, 1>}, {pipeline_mode = #tpu.pipeline_mode<synchronous>, transform_indices = @transform_2, window_bounds = array<i64: 96, 96>}]} {
    %c0_i32 = arith.constant 0 : i32
    %0 = arith.cmpi eq, %arg0, %c0_i32 : i32
    %1 = arith.extui %0 : i1 to i32
    %c0_i32_0 = arith.constant 0 : i32
    %2 = arith.cmpi ne, %1, %c0_i32_0 : i32
    scf.if %2 {
      %cst_12 = arith.constant 0.000000e+00 : f32
      %21 = vector.broadcast %cst_12 : f32 to vector<96x1xf32>
      %c0_13 = arith.constant 0 : index
      %c0_14 = arith.constant 0 : index
      %22 = vector.load %arg2[%c0_13, %c0_14] : memref<96x1xf32, #tpu.memory_space<vmem>>, vector<96x1xf32>
      tpu.vector_store %arg2[%c0_13, %c0_14], %21 {strides = array<i32>} : memref<96x1xf32, #tpu.memory_space<vmem>>, vector<96x1xf32>,
      %cst_15 = arith.constant 0.000000e+00 : f32
      %23 = vector.broadcast %cst_15 : f32 to vector<96x96xf32>
      %c0_16 = arith.constant 0 : index
      %c0_17 = arith.constant 0 : index
      %24 = vector.load %arg3[%c0_16, %c0_17] : memref<96x96xf32, #tpu.memory_space<vmem>>, vector<96x96xf32>
      tpu.vector_store %arg3[%c0_16, %c0_17], %23 {strides = array<i32>} : memref<96x96xf32, #tpu.memory_space<vmem>>, vector<96x96xf32>,
    } else {
    }
    %c0 = arith.constant 0 : index
    %c0_1 = arith.constant 0 : index
    %3 = vector.load %arg1[%c0, %c0_1] : memref<96x512xf32, #tpu.memory_space<vmem>>, vector<96x512xf32>
    %4 = tpu.iota {dimensions = array<i32: 1>} : vector<96x512xi32>
    %c512_i32 = arith.constant 512 : i32
    %5 = arith.muli %arg0, %c512_i32 : i32
    %6 = vector.broadcast %5 : i32 to vector<96x512xi32>
    %7 = arith.addi %4, %6 : vector<96x512xi32>
    %c784_i32 = arith.constant 784 : i32
    %8 = vector.broadcast %c784_i32 : i32 to vector<96x512xi32>
    %9 = arith.cmpi slt, %7, %8 : vector<96x512xi32>
    %cst = arith.constant 0.000000e+00 : f32
    %10 = vector.broadcast %cst : f32 to vector<96x512xf32>
    %11 = arith.select %9, %3, %10 : vector<96x512xi1>, vector<96x512xf32>
    %c0_2 = arith.constant 0 : index
    %c0_3 = arith.constant 0 : index
    %12 = vector.load %arg2[%c0_2, %c0_3] : memref<96x1xf32, #tpu.memory_space<vmem>>, vector<96x1xf32>
    %cst_4 = arith.constant dense<0.000000e+00> : vector<96xf32>
    %13 = vector.multi_reduction <add>, %11, %cst_4 [1] : vector<96x512xf32> to vector<96xf32>
    %14 = vector.shape_cast %13 : vector<96xf32> to vector<96x1xf32>
    %15 = arith.addf %12, %14 : vector<96x1xf32>
    %c0_5 = arith.constant 0 : index
    %c0_6 = arith.constant 0 : index
    %16 = vector.load %arg2[%c0_5, %c0_6] : memref<96x1xf32, #tpu.memory_space<vmem>>, vector<96x1xf32>
    tpu.vector_store %arg2[%c0_5, %c0_6], %15 {strides = array<i32>} : memref<96x1xf32, #tpu.memory_space<vmem>>, vector<96x1xf32>,
    %c0_7 = arith.constant 0 : index
    %c0_8 = arith.constant 0 : index
    %17 = vector.load %arg3[%c0_7, %c0_8] : memref<96x96xf32, #tpu.memory_space<vmem>>, vector<96x96xf32>
    %cst_9 = arith.constant dense<0.000000e+00> : vector<96x96xf32>
    %18 = tpu.matmul %11, %11, %cst_9 {dimension_numbers = #tpu.dot_dimension_numbers<[1], [1], [0], [0], [0, 0, 1, 0], [], []>} : vector<96x512xf32>, vector<96x512xf32>, vector<96x96xf32> -> vector<96x96xf32>
    %19 = arith.addf %17, %18 : vector<96x96xf32>
    %c0_10 = arith.constant 0 : index
    %c0_11 = arith.constant 0 : index
    %20 = vector.load %arg3[%c0_10, %c0_11] : memref<96x96xf32, #tpu.memory_space<vmem>>, vector<96x96xf32>
    tpu.vector_store %arg3[%c0_10, %c0_11], %19 {strides = array<i32>} : memref<96x96xf32, #tpu.memory_space<vmem>>, vector<96x96xf32>,
    return
  }
  func.func @transform_0(%arg0: i32) -> (i32, i32) {
    %c0_i32 = arith.constant 0 : i32
    %c0_i32_0 = arith.constant 0 : i32
    return %c0_i32, %arg0 : i32, i32
  }
  func.func @transform_1(%arg0: i32) -> (i32, i32) {
    %c0_i32 = arith.constant 0 : i32
    %c0_i32_0 = arith.constant 0 : i32
    %c0_i32_1 = arith.constant 0 : i32
    return %c0_i32, %c0_i32_0 : i32, i32
  }
  func.func @transform_2(%arg0: i32) -> (i32, i32) {
    %c0_i32 = arith.constant 0 : i32
    %c0_i32_0 = arith.constant 0 : i32
    %c0_i32_1 = arith.constant 0 : i32
    return %c0_i32, %c0_i32_0 : i32, i32
  }
}

</mosaic_0001>

<bundles_post_ra>
// kernel: tpu_custom_call.1
= control target key start
LH: loop header
LB: loop body
LE: loop exit
PB: predicated region body
PF: predicated region fallthrough
CT: control target
= control target key end

     0   :  { %8 = vsyncpa [#allocation3], 0  ;;  %s1952_s0 = inlined_call_operand.hbm [shape: f32[96,784], index: 0, kind: input, shape index: {}]   ;;  %s1953_s1 = inlined_call_operand.vmem [shape: f32[96,1], index: 1, kind: output, shape index: {0}]   ;;  %s1954_s2 = inlined_call_operand.hbm [shape: f32[96,96], index: 2, kind: output, shape index: {1}]  }
   0x1   :  { %10 = vsyncpa [#allocation3 + $0x1], 0 }
   0x2   :  { %11 = vsyncpa [#allocation4], 0  ;;  %s1098_s9 = smov 0   ;;  %s1100_s10 = smov 0  }
   0x3   :  { %s1102_s11 = smov 0   ;;  %s1104_s12 = smov 0  }
   0x4 LB: > { %s1117_s13 = sadd.s32 4294967295, %s1074_s12   ;;  %s1120_s14 = sadd.s32 1, %s1074_s12   ;;  %s1074_s12 = sphi %s1104_s12, %s1995_s12   ;;  %s1070_s11 = sphi %s1102_s11, %s1994_s11   ;;  %s1066_s10 = sphi %s1100_s10, %s1993_s10   ;;  %s1062_s9 = sphi %s1098_s9, %s1992_s9  }
   0x5   : > { %s21_s15 = ssub.s32 %s1074_s12, %s1120_s14  ;;  %s24_s16 = sadd.s32 1, %s1070_s11 }
   0x6   : > { %p22_p0 = scmp.eq.s32.totalorder %s21_s15, 0  ;;  %p31_p1 = scmp.ne.s32.totalorder %s1070_s11, %s1066_s10 }
   0x7   : > { %p32_p2 = scmp.eq.s32.totalorder %s1074_s12, 0  ;;  %p37_p3 = scmp.ne.s32.totalorder %s1066_s10, %s1062_s9 }
   0x8   : > { %s1130_s17 = scalar_select %p22_p0, %s1070_s11, %s24_s16  }
   0x9   : > { %p33_p4 = por %p32_p2, %p31_p1  ;;  %p38_p5 = scmp.eq.s32.totalorder %s1117_s13, 0 }
   0xa   : > { %p752_p7 = scmp.ge.s32.totalorder %s1074_s12, 2 }
   0xb   : > { %p1133_p6 = por %p38_p5, %p37_p3 }
   0xc   : > { %99 = sbr.rel (%p752_p7) target bundleno = 55 (0x37), region = 16 }
  0x13   : > { %102 = sbr.rel (!%p33_p4) target bundleno = 55 (0x37), region = 20  ;;  %s103_s19 = sand.u32 (%p33_p4), 1, %s1070_s11  }
  0x14   : > { %s753_s20 = sshll.u32 (%p33_p4), %s1074_s12, 2  ;;  %s935_s21 = smul.u32 (%p33_p4), 384, %s103_s19 }
  0x15   : > { %s109_s22 = ssub.s32 (%p33_p4), 7, %s753_s20  ;;  %s1146_s25 = scalar_lea.sflag (%p33_p4), [#allocation3], %s103_s19 }
  0x16   : > { %p110_p8 = scmp.lt.s32.totalorder (%p33_p4), %s109_s22, 4  ;;  %s107_s26 = scalar_lea.vmem (%p33_p4), [#allocation2], %s935_s21 }
  0x1a   : > { %s1997_s22 = smov (!%p110_p8, %s109_s22), 4 }
  0x1b   : > { %s1143_s23 = smul.u32 1536, %s1997_s22 }
  0x1d   : > { %s114_s24 = ssub.s32 6144, %s1143_s23 }
  0x1e   : > { %115 = vsyncadd %s1146_s25, %s114_s24  ;;  %p754_p9 = scmp.ne.s32.totalorder %s1143_s23, 0  ;;  %s862_s27 = sshll.u32 %s1074_s12, 9 }
  0x1f   : > { %s1154_s30 = scalar_lea.hbm %s1952_s0, %s862_s27  ;;  %s756_s3 = sshll.u32 %s1997_s22, 3 }
  0x20   : > { %s121_s4 = sshll.u32 %s107_s26, 4  ;;  %s982_s5 = scalar_lea.hbm %s1154_s30, %s1143_s23  ;;  %s1157_s4 = int_to_ptr.vmem [resolvable:$true] %s121_s4 }
  0x21   : > { %p983_p10 = scmp.ne.s32.totalorder %s1154_s30, %s982_s5  ;;  %s986_s8 = scalar_lea.hbm %s1952_s0, 10752 }
  0x22   : > { %p987_p13 = scmp.lt.u32.totalorder %s1154_s30, %s1952_s0  ;;  %p988_p0 = scmp.lt.u32.totalorder %s986_s8, %s982_s5 }
  0x23   : > { %p984_p11 = pnand %p983_p10, %p754_p9  ;;  %p990_p2 = scmp.lt.u32.totalorder %s982_s5, %s1154_s30 }
  0x24   : > { %p989_p1 = por %p988_p0, %p987_p13 }
  0x25   : > { %p985_p12 = pneg %p984_p11 }
  0x26   : > { %p991_p3 = por %p990_p2, %p989_p1 }
  0x28   : > { %p992_p4 = pnand %p991_p3, %p985_p12 }
  0x2a   : > { %995 = shalt.err (!%p992_p4)
}
  0x2b   : > { %s996_s16 = scalar_lea.vmem %s1157_s4, %s1143_s23  ;;  %s1076_s19 = smov [#allocation2]  }
  0x2c   : > { %p997_p5 = scmp.ne.s32.totalorder %s1157_s4, %s996_s16  ;;  %s1000_s20 = sshll.u32 %s1076_s19, 4  ;;  %s1001_s20 = int_to_ptr.vmem [resolvable:$false] %s1000_s20 }
  0x2d   : > { %s1002_s21 = scalar_lea.vmem %s1001_s20, 12288  ;;  %p1003_p10 = scmp.lt.s32.totalorder %s1157_s4, %s1001_s20 }
  0x2e   : > { %p998_p7 = pnand %p997_p5, %p754_p9  ;;  %p1004_p11 = scmp.lt.s32.totalorder %s1002_s21, %s996_s16 }
  0x30   : > { %p999_p8 = pneg %p998_p7  ;;  %p1005_p13 = por %p1004_p11, %p1003_p10 }
  0x32   : > { %p1006_p0 = pnand %p1005_p13, %p999_p8 }
  0x34   : > { %1009 = shalt.err (!%p1006_p0)
}
  0x35   : > { %s1077_s24 = smov 896   ;;  %s1078_s26 = smov 512  }
  0x36   : > { %127 = dma.hbm_to_vmem [thread:$0]  (%p754_p9), %s1154_s30, %s1143_s23, %s1157_s4, %s1146_s25, %s1077_s24, %s1078_s26, %s756_s3  }
  0x37 PF: > { %p759_p12 = scmp.ge.s32.totalorder %s1074_s12, 1  ;;  %p129_p1 = scmp.lt.s32.totalorder %s1074_s12, 3 }
  0x39   : > { %p130_p2 = pnand %p759_p12, %p129_p1 }
  0x3b   : > { %133 = sbr.rel (%p130_p2) target bundleno = 420 (0x1a4), region = 24 }
  0x42   : > { %s135_s27 = sand.u32 1, %s1066_s10  }
  0x43   : > { %s936_s28 = smul.u32 384, %s135_s27  ;;  %s136_s29 = scalar_lea.sflag [#allocation3], %s135_s27 }
  0x45   : > { %s1189_s5 = scalar_lea.vmem [#allocation2], %s936_s28 }
  0x46   : > { %1053 = dma.done.wait (%p1133_p6), %s136_s29, 6144  }
  0x47   : > { %1055 = vsyncadd (%p1133_p6), %s136_s29, 4294961152  ;;  %p760_p9 = scmp.ne.s32.totalorder %s1117_s13, 0 }
  0x48   : > { %vm164_vm0 = vcmask (!%p760_p9), 7168   ;;  %vm177_vm1 = vcmask (!%p760_p9), 785408   ;;  %v1079_v0 = vmov (!%p760_p9), 0.0  }
  0x49   : > { %163 = sbr.rel (%p760_p9) target bundleno = 85 (0x55), region = 32  ;;  %165 = vst.msk [vmem:[%s1953_s1] sm:$0xff] (!%p760_p9), %vm164_vm0, %v1079_v0  ;;  %166 = vst.msk [vmem:[%s1953_s1 + $0x8] sm:$0xff] (!%p760_p9), %vm164_vm0, %v1079_v0 }
  0x4a   : > { %167 = vst.msk [vmem:[%s1953_s1 + $0x10] sm:$0xff] (!%p760_p9), %vm164_vm0, %v1079_v0  ;;  %168 = vst.msk [vmem:[%s1953_s1 + $0x18] sm:$0xff] (!%p760_p9), %vm164_vm0, %v1079_v0 }
  0x4b   : > { %169 = vst.msk [vmem:[%s1953_s1 + $0x20] sm:$0xff] (!%p760_p9), %vm164_vm0, %v1079_v0  ;;  %170 = vst.msk [vmem:[%s1953_s1 + $0x28] sm:$0xff] (!%p760_p9), %vm164_vm0, %v1079_v0 }
  0x4c   : > { %171 = vst.msk [vmem:[%s1953_s1 + $0x30] sm:$0xff] (!%p760_p9), %vm164_vm0, %v1079_v0  ;;  %172 = vst.msk [vmem:[%s1953_s1 + $0x38] sm:$0xff] (!%p760_p9), %vm164_vm0, %v1079_v0 }
  0x4d   : > { %173 = vst.msk [vmem:[%s1953_s1 + $0x40] sm:$0xff] (!%p760_p9), %vm164_vm0, %v1079_v0  ;;  %174 = vst.msk [vmem:[%s1953_s1 + $0x48] sm:$0xff] (!%p760_p9), %vm164_vm0, %v1079_v0 }
  0x4e   : > { %175 = vst.msk [vmem:[%s1953_s1 + $0x50] sm:$0xff] (!%p760_p9), %vm164_vm0, %v1079_v0  ;;  %176 = vst.msk [vmem:[%s1953_s1 + $0x58] sm:$0xff] (!%p760_p9), %vm164_vm0, %v1079_v0 }
  0x4f   : > { %178 = vst.msk [vmem:[#allocation5] sm:$0xff] (!%p760_p9), %vm177_vm1, %v1079_v0  ;;  %179 = vst.msk [vmem:[#allocation5 + $0x8] sm:$0xff] (!%p760_p9), %vm177_vm1, %v1079_v0 }
  0x50   : > { %180 = vst.msk [vmem:[#allocation5 + $0x10] sm:$0xff] %vm177_vm1, %v1079_v0  ;;  %181 = vst.msk [vmem:[#allocation5 + $0x18] sm:$0xff] %vm177_vm1, %v1079_v0 }
  0x51   : > { %182 = vst.msk [vmem:[#allocation5 + $0x20] sm:$0xff] %vm177_vm1, %v1079_v0  ;;  %183 = vst.msk [vmem:[#allocation5 + $0x28] sm:$0xff] %vm177_vm1, %v1079_v0 }
  0x52   : > { %184 = vst.msk [vmem:[#allocation5 + $0x30] sm:$0xff] %vm177_vm1, %v1079_v0  ;;  %185 = vst.msk [vmem:[#allocation5 + $0x38] sm:$0xff] %vm177_vm1, %v1079_v0 }
  0x53   : > { %186 = vst.msk [vmem:[#allocation5 + $0x40] sm:$0xff] %vm177_vm1, %v1079_v0  ;;  %187 = vst.msk [vmem:[#allocation5 + $0x48] sm:$0xff] %vm177_vm1, %v1079_v0 }
  0x54   : > { %188 = vst.msk [vmem:[#allocation5 + $0x50] sm:$0xff] %vm177_vm1, %v1079_v0  ;;  %189 = vst.msk [vmem:[#allocation5 + $0x58] sm:$0xff] %vm177_vm1, %v1079_v0 }
  0x55 PF: > { %v238_v1 = vlaneseq  ;;  %s761_s23 = sshll.u32 %s1117_s13, 9  ;;  %v191_v3 = vld [vmem:[%s1189_s5 + $0x8] sm:$0xff]  ;;  %v1250_v6 = vld [vmem:[%s1189_s5 + $0x18] sm:$0xff]  ;;  %v1256_v8 = vld [vmem:[%s1189_s5] sm:$0xff]  ;;  %vm385_vm10 = vcmask 7168   ;;  %vm672_vm11 = vcmask 785408  }
  0x56   : > { %v244_v2 = vstv %s761_s23  ;;  %v1247_v4 = vld [vmem:[%s1189_s5 + $0x28] sm:$0xff]  ;;  %v1253_v7 = vld [vmem:[%s1189_s5 + $0x38] sm:$0xff]  ;;  %v1259_v11 = vld [vmem:[%s1189_s5 + $0x20] sm:$0xff]  ;;  %s1080_s30 = smov [#allocation5]   ;;  %p942_p6 = scmp.eq.s32.totalorder %s1117_s13, 1 }
  0x57   : > { %v239_v5 = vand.u32 127, %v238_v1  ;;  %v1264_v13 = vld [vmem:[%s1189_s5 + $0x10] sm:$0xff]  ;;  %v863_v16 = vpack.c.bf16 %v1247_v4, %v191_v3  ;;  %v1271_v17 = vld [vmem:[%s1189_s5 + $0x48] sm:$0xff]  ;;  %v1284_v22 = vld [vmem:[%s1189_s5 + $0x58] sm:$0xff]  ;;  %v899_v25 = vpack.c.bf16 %v1253_v7, %v1250_v6  ;;  %v866_v26 = vpack.c.bf16 %v1259_v11, %v1256_v8  ;;  %s694_s3 = sshll.u32 %s1080_s30, 4  ;;  %s695_s3 = int_to_ptr.vmem [resolvable:$true] %s694_s3 }
  0x58   : > { %v1267_v14 = vld [vmem:[%s1189_s5 + $0x30] sm:$0xff]  ;;  %v1274_v18 = vld [vmem:[%s1189_s5 + $0x68] sm:$0xff]  ;;  %v1287_v23 = vld [vmem:[%s1189_s5 + $0x78] sm:$0xff]  ;;  %s1010_s18 = scalar_lea.vmem %s695_s3, 1536  ;;  %p1017_p7 = scmp.lt.s32.totalorder %s695_s3, %s695_s3 }
  0x59   : > { %v240_v9 = vadd.s32 128, %v239_v5  ;;  %v242_v10 = vadd.s32 384, %v239_v5  ;;  %v1261_v12 = vadd.s32 %v244_v2, %v239_v5  ;;  %v241_v15 = vadd.s32 256, %v239_v5  ;;  %v1290_v24 = vld [vmem:[%s1189_s5 + $0x40] sm:$0xff]  ;;  %v1326_v34 = vld [vmem:[%s1189_s5 + $0x50] sm:$0xff]  ;;  %v1351_v39 = vld [vmem:[%s1189_s5 + $0x88] sm:$0xff]  ;;  %p1011_p3 = scmp.ne.s32.totalorder %s695_s3, %s1010_s18  ;;  %p1018_p8 = scmp.lt.s32.totalorder %s1010_s18, %s1010_s18 }
  0x5a   : > { %v902_v27 = vpack.c.bf16 %v1267_v14, %v1264_v13  ;;  %v1299_v28 = vld [vmem:[%s1189_s5 + $0x60] sm:$0xff]  ;;  %v869_v31 = vpack.c.bf16 %v1274_v18, %v1271_v17  ;;  %v905_v33 = vpack.c.bf16 %v1287_v23, %v1284_v22  ;;  %v1329_v35 = vld [vmem:[%s1189_s5 + $0x70] sm:$0xff]  ;;  %v1354_v40 = vld [vmem:[%s1189_s5 + $0xa8] sm:$0xff] }
  0x5b   : > { %v1276_v19 = vadd.s32 %v244_v2, %v240_v9  ;;  %v1278_v20 = vadd.s32 %v244_v2, %v242_v10  ;;  %vm249_vm2 = vcmp.lt.s32.totalorder %v1261_v12, 784  ;;  %v1281_v21 = vadd.s32 %v244_v2, %v241_v15  ;;  %v1371_v44 = vld [vmem:[%s1189_s5 + $0x98] sm:$0xff]  ;;  %v1394_v51 = vld [vmem:[%s1189_s5 + $0x80] sm:$0xff]  ;;  %v1404_v56 = vld [vmem:[%s1189_s5 + $0x90] sm:$0xff]  ;;  %p1012_p4 = pnand %p1011_p3, %p942_p6  ;;  %p1019_p10 = por %p1018_p8, %p1017_p7 }
  0x5c   : > { %v261_v29 = vsel %vm249_vm2, %v1290_v24, 0.0  ;;  %vm1309_vm5 = vmpackc.low %vm249_vm2, %vm249_vm2  ;;  %v872_v38 = vpack.c.bf16 %v1299_v28, %v1290_v24  ;;  %v253_v46 = vsel %vm249_vm2, %v1256_v8, 0.0  ;;  %v908_v49 = vpack.c.bf16 %v1329_v35, %v1326_v34  ;;  %v1391_v50 = vld [vmem:[%s1189_s5 + $0xb8] sm:$0xff]  ;;  %v1397_v52 = vld [vmem:[%s1189_s5 + $0xa0] sm:$0xff] }
  0x5d   : > { %vm250_vm3 = vcmp.lt.s32.totalorder %v1276_v19, 784  ;;  %vm252_vm4 = vcmp.lt.s32.totalorder %v1278_v20, 784  ;;  %vm251_vm6 = vcmp.lt.s32.totalorder %v1281_v21, 784  ;;  %v875_v55 = vpack.c.bf16 %v1354_v40, %v1351_v39  ;;  %v1407_v57 = vld [vmem:[%s1189_s5 + $0xb0] sm:$0xff]  ;;  %v1410_v58 = vld [vmem:[%s1189_s5 + $0xc8] sm:$0xff]  ;;  %v1428_v0 = vld [vmem:[%s1189_s5 + $0xd8] sm:$0xff]  ;;  %p1013_p5 = pneg %p1012_p4 }
  0x5e   : > { %vm1319_vm7 = vmpackc.low %vm250_vm3, %vm250_vm3  ;;  %786 = vmatprep.mubr.msk.f32.mxu0 %vm250_vm3, %v191_v3  ;;  %834 = vmatprep.mubr.msk.f32.mxu1 %vm252_vm4, %v1250_v6  ;;  %v262_v36 = vsel %vm250_vm3, %v1271_v17, 0.0  ;;  %v263_v41 = vsel %vm251_vm6, %v1326_v34, 0.0  ;;  %v264_v45 = vsel %vm252_vm4, %v1284_v22, 0.0  ;;  %v254_v47 = vsel %vm250_vm3, %v191_v3, 0.0  ;;  %1973 = vst [vmem:[#allocation8_spill] sm:$0xff] %v1407_v57  ;;  %v1425_v63 = vld [vmem:[%s1189_s5 + $0xe8] sm:$0xff] }
  0x5f   : > { %865 = vmatprep.subr.msk.bf16.mxu0 %vm1319_vm7, %v863_v16  ;;  %vm1344_vm8 = vmpackc.low %vm252_vm4, %vm252_vm4  ;;  %v323_v42 = vadd.f32 %v262_v36, %v261_v29  ;;  %v255_v48 = vsel %vm251_vm6, %v1264_v13, 0.0  ;;  %v313_v54 = vadd.f32 %v254_v47, %v253_v46  ;;  %1974 = vst [vmem:[#allocation9_spill] sm:$0xff] %v1410_v58  ;;  %v256_v59 = vsel %vm252_vm4, %v1250_v6, 0.0  ;;  %v1431_v1 = vld [vmem:[%s1189_s5 + $0xf8] sm:$0xff]  ;;  %v301_v19 = vld [vmem:[%s1953_s1] sm:$0xff]  ;;  %p1020_p11 = pnand %p1019_p10, %p1013_p5 }
  0x60   : > { %901 = vmatprep.subr.msk.bf16.mxu1 %vm1344_vm8, %v899_v25  ;;  %868 = vmatpush1.bf16.xpose.msk.msra.mxu0 %vm1309_vm5, %v866_v26  ;;  %vm1366_vm9 = vmpackc.low %vm251_vm6, %vm251_vm6  ;;  %v265_v60 = vsel %vm249_vm2, %v1299_v28, 0.0  ;;  %v266_v61 = vsel %vm250_vm3, %v1274_v18, 0.0  ;;  %v258_v62 = vsel %vm250_vm3, %v1247_v4, 0.0  ;;  %1975 = vst [vmem:[#allocation10_spill] sm:$0xff] %v1425_v63  ;;  %v267_v5 = vsel %vm251_vm6, %v1329_v35, 0.0  ;;  %v304_v12 = vld [vmem:[%s1953_s1 + $0x18] sm:$0xff] }
  0x61   : > { %904 = vmatpush1.bf16.xpose.msk.msra.mxu1 %vm1366_vm9, %v902_v27  ;;  %871 = vmatprep.subr.msk.bf16.mxu0 %vm1319_vm7, %v869_v31  ;;  %v324_v53 = vadd.f32 %v323_v42, %v263_v41  ;;  %1976 = vst [vmem:[#allocation11_spill] sm:$0xff] %v1428_v0  ;;  %1977 = vst [vmem:[#allocation12_spill] sm:$0xff] %v1431_v1  ;;  %v314_v3 = vadd.f32 %v313_v54, %v255_v48  ;;  %v257_v15 = vsel %vm249_vm2, %v1259_v11, 0.0  ;;  %v302_v32 = vld [vmem:[%s1953_s1 + $0x8] sm:$0xff]  ;;  %v305_v43 = vld [vmem:[%s1953_s1 + $0x20] sm:$0xff] }
  0x62   : > { %907 = vmatprep.subr.msk.bf16.mxu1 %vm1344_vm8, %v905_v33  ;;  %v911_v6 = vpack.c.bf16 %v1391_v50, %v1371_v44  ;;  %v878_v9 = vpack.c.bf16 %v1397_v52, %v1394_v51  ;;  %v328_v10 = vadd.f32 %v266_v61, %v265_v60  ;;  %v914_v16 = vpack.c.bf16 %v1407_v57, %v1404_v56 }
  0x63   : > { %v325_v2 = vadd.f32 %v324_v53, %v264_v45  ;;  %v315_v25 = vadd.f32 %v314_v3, %v256_v59  ;;  %v268_v26 = vsel %vm252_vm4, %v1287_v23, 0.0  ;;  %v259_v27 = vsel %vm251_vm6, %v1267_v14, 0.0  ;;  %v1477_v59 = vld [vmem:[%s1189_s5 + $0xe0] sm:$0xff] }
  0x64   : > { %v881_v29 = vpack.c.bf16 %v1425_v63, %v1410_v58  ;;  %v329_v33 = vadd.f32 %v328_v10, %v267_v5  ;;  %v318_v36 = vadd.f32 %v258_v62, %v257_v15  ;;  %v260_v41 = vsel %vm252_vm4, %v1253_v7, 0.0  ;;  %1978 = vst [vmem:[#allocation13_spill] sm:$0xff] %v1477_v59  ;;  %v1497_v62 = vld [vmem:[%s1189_s5 + $0xf0] sm:$0xff] }
  0x65   : > { %326 = vadd.xlane.f32.xlu1 %v325_v2  ;;  %316 = vadd.xlane.f32.xlu0 %v315_v25  ;;  %v273_v42 = vsel %vm249_vm2, %v1397_v52, 0.0  ;;  %v274_v45 = vsel %vm250_vm3, %v1354_v40, 0.0  ;;  %v275_v46 = vsel %vm251_vm6, %v1407_v57, 0.0  ;;  %v276_v53 = vsel %vm252_vm4, %v1391_v50, 0.0  ;;  %1980 = vst [vmem:[#allocation15_spill] sm:$0xff] %v1497_v62 }
  0x66   : > { %v330_v47 = vadd.f32 %v329_v33, %v268_v26  ;;  %v319_v48 = vadd.f32 %v318_v36, %v259_v27  ;;  %v338_v54 = vadd.f32 %v274_v45, %v273_v42  ;;  %v269_v60 = vsel %vm249_vm2, %v1394_v51, 0.0  ;;  %v1515_v27 = vld [vmem:[%s1189_s5 + $0xd0] sm:$0xff]  ;;  %v1518_v33 = vld [vmem:[%s1189_s5 + $0x120] sm:$0xff] }
  0x67   : > { %v271_v61 = vsel %vm251_vm6, %v1404_v56, 0.0  ;;  %v281_v10 = vsel %vm249_vm2, %v1477_v59, 0.0  ;;  %v282_v15 = vsel %vm250_vm3, %v1425_v63, 0.0  ;;  %v284_v25 = vsel %vm252_vm4, %v1431_v1, 0.0  ;;  %1981 = vst [vmem:[#allocation16_spill] sm:$0xff] %v1515_v27 }
  0x68   : > { %874 = vmatpush1.bf16.xpose.msk.msra.mxu0 %vm1309_vm5, %v872_v38  ;;  %v270_v38 = vsel %vm250_vm3, %v1351_v39, 0.0  ;;  %v320_v2 = vadd.f32 %v319_v48, %v260_v41  ;;  %v339_v3 = vadd.f32 %v338_v54, %v275_v46  ;;  %v348_v42 = vadd.f32 %v282_v15, %v281_v10  ;;  %v1524_v46 = vld [vmem:[%s1189_s5 + $0x128] sm:$0xff] }
  0x69   : > { %910 = vmatpush1.bf16.xpose.msk.msra.mxu1 %vm1366_vm9, %v908_v49  ;;  %877 = vmatprep.subr.msk.bf16.mxu0 %vm1319_vm7, %v875_v55  ;;  %v272_v49 = vsel %vm252_vm4, %v1371_v44, 0.0  ;;  %v1494_v55 = vld [vmem:[%s1189_s5 + $0xc0] sm:$0xff]  ;;  %v333_v5 = vadd.f32 %v270_v38, %v269_v60  ;;  %v278_v45 = vsel %vm250_vm3, %v1410_v58, 0.0  ;;  %v279_v48 = vsel %vm251_vm6, %v1515_v27, 0.0  ;;  %v1550_v15 = vld [vmem:[%s1189_s5 + $0x108] sm:$0xff]  ;;  %v1635_v58 = vld [vmem:[%s1189_s5 + $0x158] sm:$0xff] }
  0x6a   : > { %913 = vmatprep.subr.msk.bf16.mxu1 %vm1344_vm8, %v911_v6  ;;  %1979 = vst [vmem:[#allocation14_spill] sm:$0xff] %v1494_v55  ;;  %331 = vadd.xlane.f32.xlu1 %v330_v47  ;;  %v283_v6 = vsel %vm251_vm6, %v1497_v62, 0.0  ;;  %v277_v26 = vsel %vm249_vm2, %v1494_v55, 0.0  ;;  %v340_v36 = vadd.f32 %v339_v3, %v276_v53  ;;  %v1527_v47 = vld [vmem:[%s1189_s5 + $0x130] sm:$0xff]  ;;  %v280_v53 = vsel %vm252_vm4, %v1428_v0, 0.0  ;;  %v1539_v38 = vld [vmem:[%s1189_s5 + $0x100] sm:$0xff] }
  0x6b   : > { %321 = vadd.xlane.f32.xlu0 %v320_v2  ;;  %v334_v41 = vadd.f32 %v333_v5, %v271_v61  ;;  %v343_v54 = vadd.f32 %v278_v45, %v277_v26  ;;  %v289_v60 = vsel %vm249_vm2, %v1518_v33, 0.0  ;;  %v349_v2 = vadd.f32 %v348_v42, %v283_v6  ;;  %v1553_v26 = vld [vmem:[%s1189_s5 + $0x138] sm:$0xff]  ;;  %v1570_v45 = vld [vmem:[%s1189_s5 + $0x160] sm:$0xff] }
  0x6c   : > { %v290_v3 = vsel %vm250_vm3, %v1524_v46, 0.0  ;;  %v291_v5 = vsel %vm251_vm6, %v1527_v47, 0.0  ;;  %v884_v10 = vpack.c.bf16 %v1477_v59, %v1494_v55  ;;  %v1567_v42 = vld [vmem:[%s1189_s5 + $0x118] sm:$0xff]  ;;  %v1982_v63 = vpack.c.bf16 %v1431_v1, %v1428_v0 }
  0x6d   : > { %v335_v61 = vadd.f32 %v334_v41, %v272_v49  ;;  %v344_v49 = vadd.f32 %v343_v54, %v279_v48  ;;  %v358_v6 = vadd.f32 %v290_v3, %v289_v60  ;;  %v285_v41 = vsel %vm249_vm2, %v1539_v38, 0.0 }
  0x6e   : > { %341 = vadd.xlane.f32.xlu1 %v340_v36  ;;  %v1556_v36 = vld [vmem:[%s1189_s5 + $0x110] sm:$0xff]  ;;  %v350_v31 = vadd.f32 %v349_v2, %v284_v25  ;;  %v292_v48 = vsel %vm252_vm4, %v1553_v26, 0.0  ;;  %v286_v54 = vsel %vm250_vm3, %v1550_v15, 0.0  ;;  %v1595_v25 = vld [vmem:[%s1189_s5 + $0x140] sm:$0xff]  ;;  %v920_v0 = vpack.c.bf16 %v1497_v62, %v1515_v27 }
  0x6f   : > { %336 = vadd.xlane.f32.xlu0 %v335_v61  ;;  %v287_v60 = vsel %vm251_vm6, %v1556_v36, 0.0  ;;  %v1598_v61 = vld [vmem:[%s1189_s5 + $0x170] sm:$0xff]  ;;  %v345_v2 = vadd.f32 %v344_v49, %v280_v53  ;;  %v359_v3 = vadd.f32 %v358_v6, %v291_v5  ;;  %v353_v59 = vadd.f32 %v286_v54, %v285_v41 }
  0x70   : > { %880 = vmatpush1.bf16.xpose.msk.msra.mxu0 %vm1309_vm5, %v878_v9  ;;  %v1592_v9 = vld [vmem:[%s1189_s5 + $0x168] sm:$0xff]  ;;  %v288_v53 = vsel %vm252_vm4, %v1567_v42, 0.0  ;;  %v299_v49 = vsel %vm251_vm6, %v1598_v61, 0.0  ;;  %v293_v6 = vsel %vm249_vm2, %v1595_v25, 0.0  ;;  %v1627_v41 = vld [vmem:[%s1189_s5 + $0x150] sm:$0xff] }
  0x71   : > { %916 = vmatpush1.bf16.xpose.msk.msra.mxu1 %vm1366_vm9, %v914_v16  ;;  %883 = vmatprep.subr.msk.bf16.mxu0 %vm1319_vm7, %v881_v29  ;;  %v297_v16 = vsel %vm249_vm2, %v1570_v45, 0.0  ;;  %v1609_v29 = vld [vmem:[%s1189_s5 + $0x148] sm:$0xff]  ;;  %v298_v5 = vsel %vm250_vm3, %v1592_v9, 0.0  ;;  %v354_v54 = vadd.f32 %v353_v59, %v287_v60  ;;  %v887_v60 = vpack.c.bf16 %v1524_v46, %v1550_v15 }
  0x72   : > { %919 = vmatprep.subr.msk.bf16.mxu1 %vm1344_vm8, %v1982_v63  ;;  %351 = vadd.xlane.f32.xlu1 %v350_v31  ;;  %v1624_v63 = vld [vmem:[%s1189_s5 + $0x178] sm:$0xff]  ;;  %v360_v31 = vadd.f32 %v359_v3, %v292_v48  ;;  %v368_v1 = vadd.f32 %v298_v5, %v297_v16  ;;  %v294_v55 = vsel %vm250_vm3, %v1609_v29, 0.0  ;;  %v295_v48 = vsel %vm251_vm6, %v1627_v41, 0.0 }
  0x73   : > { %346 = vadd.xlane.f32.xlu0 %v345_v2  ;;  %v300_v57 = vsel %vm252_vm4, %v1624_v63, 0.0  ;;  %v363_v59 = vadd.f32 %v294_v55, %v293_v6  ;;  %v355_v3 = vadd.f32 %v354_v54, %v288_v53  ;;  %v296_v5 = vsel %vm252_vm4, %v1635_v58, 0.0 }
  0x74   : > { %v369_v16 = vadd.f32 %v368_v1, %v299_v49  ;;  %v923_v2 = vpack.c.bf16 %v1553_v26, %v1567_v42  ;;  %v890_v1 = vpack.c.bf16 %v1518_v33, %v1539_v38 }
  0x75   : > { %v364_v62 = vadd.f32 %v363_v59, %v295_v48 }
  0x76   : > { %361 = vadd.xlane.f32.xlu1 %v360_v31  ;;  %v370_v27 = vadd.f32 %v369_v16, %v300_v57  ;;  %v926_v57 = vpack.c.bf16 %v1527_v47, %v1556_v36 }
  0x77   : > { %356 = vadd.xlane.f32.xlu0 %v355_v3  ;;  %v365_v55 = vadd.f32 %v364_v62, %v296_v5  ;;  %v893_v62 = vpack.c.bf16 %v1592_v9, %v1609_v29  ;;  %v399_v3 = vld [vmem:[#allocation5 + $0x8] sm:$0xff] }
  0x78   : > { %886 = vmatpush1.bf16.xpose.msk.msra.mxu0 %vm1309_vm5, %v884_v10  ;;  %v932_v10 = vpack.c.bf16 %v1598_v61, %v1627_v41 }
  0x79   : > { %922 = vmatpush1.bf16.xpose.msk.msra.mxu1 %vm1366_vm9, %v920_v0  ;;  %889 = vmatprep.subr.msk.bf16.mxu0 %vm1319_vm7, %v887_v60  ;;  %v929_v0 = vpack.c.bf16 %v1624_v63, %v1635_v58 }
  0x7a   : > { %925 = vmatprep.subr.msk.bf16.mxu1 %vm1344_vm8, %v923_v2  ;;  %371 = vadd.xlane.f32.xlu1 %v370_v27  ;;  %v896_v27 = vpack.c.bf16 %v1570_v45, %v1595_v25 }
  0x7b   : > { %366 = vadd.xlane.f32.xlu0 %v365_v55 }
  0x80   : > { %892 = vmatpush1.bf16.xpose.msk.msra.mxu0 %vm1309_vm5, %v890_v1 }
  0x81   : > { %928 = vmatpush1.bf16.xpose.msk.msra.mxu1 %vm1366_vm9, %v926_v57  ;;  %895 = vmatprep.subr.msk.bf16.mxu0 %vm1319_vm7, %v893_v62  ;;  %v400_v62 = vld [vmem:[#allocation5 + $0x10] sm:$0xff] }
  0x82   : > { %931 = vmatprep.subr.msk.bf16.mxu1 %vm1344_vm8, %v929_v0 }
  0x88   : > { %898 = vmatpush1.bf16.xpose.msk.msra.mxu0 %vm1309_vm5, %v896_v27 }
  0x89   : > { %934 = vmatpush1.bf16.xpose.msk.msra.mxu1 %vm1366_vm9, %v932_v10 }
  0x8f   : > { %787 = vmatmul.mubr.msk.f32.vlgmr.msra.gmra.mrb[0].mxu0 %vm249_vm2, %v1256_v8  ;;  %v1985_v8 = vld [vmem:[#allocation11_spill] sm:$0xff] }
  0x90   : > { %835 = vmatmul.mubr.msk.f32.vlgmr.msra.gmra.mrb[0].mxu1 %vm251_vm6, %v1264_v13  ;;  %788 = vmatprep.mubr.msk.f32.mxu0 %vm250_vm3, %v1247_v4  ;;  %v1983_v4 = vld [vmem:[#allocation8_spill] sm:$0xff] }
  0x91   : > { %836 = vmatprep.mubr.msk.f32.mxu1 %vm252_vm4, %v1253_v7  ;;  %v1984_v7 = vld [vmem:[#allocation9_spill] sm:$0xff]  ;;  %v1987_v13 = vld [vmem:[#allocation16_spill] sm:$0xff] }
  0x93   : > { %789 = vmatmul.mubr.msk.f32.gmra.mrb[2].mxu0 %vm249_vm2, %v1259_v11  ;;  %v1986_v11 = vld [vmem:[#allocation14_spill] sm:$0xff] }
  0x94   : > { %837 = vmatmul.mubr.msk.f32.gmra.mrb[2].mxu1 %vm251_vm6, %v1267_v14  ;;  %790 = vmatprep.mubr.msk.f32.mxu0 %vm250_vm3, %v1271_v17  ;;  %v1988_v14 = vld [vmem:[#allocation10_spill] sm:$0xff]  ;;  %v1989_v17 = vld [vmem:[#allocation12_spill] sm:$0xff] }
  0x95   : > { %838 = vmatprep.mubr.msk.f32.mxu1 %vm252_vm4, %v1284_v22  ;;  %v1991_v22 = vld [vmem:[#allocation15_spill] sm:$0xff] }
  0x97   : > { %791 = vmatmul.mubr.msk.f32.gmra.mrb[4].mxu0 %vm249_vm2, %v1290_v24 }
  0x98   : > { %839 = vmatmul.mubr.msk.f32.gmra.mrb[4].mxu1 %vm251_vm6, %v1326_v34  ;;  %792 = vmatprep.mubr.msk.f32.mxu0 %vm250_vm3, %v1274_v18  ;;  %v1990_v18 = vld [vmem:[#allocation13_spill] sm:$0xff] }
  0x99   : > { %840 = vmatprep.mubr.msk.f32.mxu1 %vm252_vm4, %v1287_v23  ;;  %v303_v23 = vld [vmem:[%s1953_s1 + $0x10] sm:$0xff] }
  0x9b   : > { %793 = vmatmul.mubr.msk.f32.gmra.mrb[6].mxu0 %vm249_vm2, %v1299_v28 }
  0x9c   : > { %841 = vmatmul.mubr.msk.f32.gmra.mrb[6].mxu1 %vm251_vm6, %v1329_v35  ;;  %794 = vmatprep.mubr.msk.f32.mxu0 %vm250_vm3, %v1351_v39  ;;  %v306_v39 = vld [vmem:[%s1953_s1 + $0x28] sm:$0xff] }
  0x9d   : > { %842 = vmatprep.mubr.msk.f32.mxu1 %vm252_vm4, %v1371_v44 }
  0x9f   : > { %795 = vmatmul.mubr.msk.f32.gmra.mrb[8].mxu0 %vm249_vm2, %v1394_v51 }
  0xa0   : > { %843 = vmatmul.mubr.msk.f32.gmra.mrb[8].mxu1 %vm251_vm6, %v1404_v56  ;;  %796 = vmatprep.mubr.msk.f32.mxu0 %vm250_vm3, %v1354_v40 }
  0xa1   : > { %844 = vmatprep.mubr.msk.f32.mxu1 %vm252_vm4, %v1391_v50 }
  0xa3   : > { %797 = vmatmul.mubr.msk.f32.gmra.mrb[10].mxu0 %vm249_vm2, %v1397_v52  ;;  %v308_v52 = vld [vmem:[%s1953_s1 + $0x38] sm:$0xff] }
  0xa4   : > { %845 = vmatmul.mubr.msk.f32.gmra.mrb[10].mxu1 %vm251_vm6, %v1983_v4  ;;  %798 = vmatprep.mubr.msk.f32.mxu0 %vm250_vm3, %v1984_v7 }
  0xa5   : > { %846 = vmatprep.mubr.msk.f32.mxu1 %vm252_vm4, %v1985_v8 }
  0xa7   : > { %799 = vmatmul.mubr.msk.f32.gmra.mrb[12].mxu0 %vm249_vm2, %v1986_v11  ;;  %v401_v11 = vld [vmem:[#allocation5 + $0x18] sm:$0xff] }
  0xa8   : > { %847 = vmatmul.mubr.msk.f32.gmra.mrb[12].mxu1 %vm251_vm6, %v1987_v13  ;;  %800 = vmatprep.mubr.msk.f32.mxu0 %vm250_vm3, %v1988_v14 }
  0xa9   : > { %848 = vmatprep.mubr.msk.f32.mxu1 %vm252_vm4, %v1989_v17 }
  0xab   : > { %801 = vmatmul.mubr.msk.f32.gmra.mrb[14].mxu0 %vm249_vm2, %v1990_v18 }
  0xac   : > { %849 = vmatmul.mubr.msk.f32.gmra.mrb[14].mxu1 %vm251_vm6, %v1991_v22  ;;  %802 = vmatprep.mubr.msk.f32.mxu0 %vm250_vm3, %v1550_v15 }
  0xad   : > { %850 = vmatprep.mubr.msk.f32.mxu1 %vm252_vm4, %v1567_v42 }
  0xaf   : > { %803 = vmatmul.mubr.msk.f32.gmra.mrb[16].mxu0 %vm249_vm2, %v1539_v38  ;;  %v310_v38 = vld [vmem:[%s1953_s1 + $0x48] sm:$0xff] }
  0xb0   : > { %851 = vmatmul.mubr.msk.f32.gmra.mrb[16].mxu1 %vm251_vm6, %v1556_v36  ;;  %804 = vmatprep.mubr.msk.f32.mxu0 %vm250_vm3, %v1524_v46 }
  0xb1   : > { %852 = vmatprep.mubr.msk.f32.mxu1 %vm252_vm4, %v1553_v26  ;;  %v309_v26 = vld [vmem:[%s1953_s1 + $0x40] sm:$0xff] }
  0xb3   : > { %805 = vmatmul.mubr.msk.f32.gmra.mrb[18].mxu0 %vm249_vm2, %v1518_v33 }
  0xb4   : > { %853 = vmatmul.mubr.msk.f32.gmra.mrb[18].mxu1 %vm251_vm6, %v1527_v47  ;;  %806 = vmatprep.mubr.msk.f32.mxu0 %vm250_vm3, %v1609_v29 }
  0xb5   : > { %854 = vmatprep.mubr.msk.f32.mxu1 %vm252_vm4, %v1635_v58  ;;  %v307_v58 = vld [vmem:[%s1953_s1 + $0x30] sm:$0xff] }
  0xb7   : > { %807 = vmatmul.mubr.msk.f32.gmra.mrb[20].mxu0 %vm249_vm2, %v1595_v25 }
  0xb8   : > { %855 = vmatmul.mubr.msk.f32.gmra.mrb[20].mxu1 %vm251_vm6, %v1627_v41  ;;  %808 = vmatprep.mubr.msk.f32.mxu0 %vm250_vm3, %v1592_v9  ;;  %v312_v9 = vld [vmem:[%s1953_s1 + $0x58] sm:$0xff] }
  0xb9   : > { %856 = vmatprep.mubr.msk.f32.mxu1 %vm252_vm4, %v1624_v63  ;;  %v398_v63 = vld [vmem:[#allocation5] sm:$0xff] }
  0xbb   : > { %809 = vmatmul.mubr.msk.f32.gmra.mrb[22].mxu0 %vm249_vm2, %v1570_v45 }
  0xbc   : > { %857 = vmatmul.mubr.msk.f32.gmra.mrb[22].mxu1 %vm251_vm6, %v1598_v61  ;;  %v311_v61 = vld [vmem:[%s1953_s1 + $0x50] sm:$0xff] }
  0xf2   : > { %v327_v24 = vpop.xlane.xlu1 %326  ;;  %v317_v28 = vpop.xlane.xlu0 %316 }
  0xf3   : > { %v375_v20 = vadd.f32 %v327_v24, %v303_v23  ;;  %v373_v30 = vadd.f32 %v317_v28, %v301_v19  ;;  %v402_v24 = vld [vmem:[#allocation5 + $0x20] sm:$0xff] }
  0xf5   : > { %388 = vst.msk [vmem:[%s1953_s1 + $0x10] sm:$0xff] %vm385_vm10, %v375_v20  ;;  %386 = vst.msk [vmem:[%s1953_s1] sm:$0xff] %vm385_vm10, %v373_v30 }
  0xf7   : > { %v332_v21 = vpop.xlane.xlu1 %331 }
  0xf8   : > { %v322_v34 = vpop.xlane.xlu0 %321  ;;  %v376_v35 = vadd.f32 %v332_v21, %v304_v12 }
  0xf9   : > { %v374_v37 = vadd.f32 %v322_v34, %v302_v32  ;;  %v403_v32 = vld [vmem:[#allocation5 + $0x28] sm:$0xff] }
  0xfa   : > { %389 = vst.msk [vmem:[%s1953_s1 + $0x18] sm:$0xff] %vm385_vm10, %v376_v35 }
  0xfb   : > { %387 = vst.msk [vmem:[%s1953_s1 + $0x8] sm:$0xff] %vm385_vm10, %v374_v37  ;;  %v342_v40 = vpop.xlane.xlu1 %341 }
  0xfc   : > { %v337_v44 = vpop.xlane.xlu0 %336  ;;  %v378_v50 = vadd.f32 %v342_v40, %v306_v39 }
  0xfd   : > { %v377_v51 = vadd.f32 %v337_v44, %v305_v43  ;;  %v404_v44 = vld [vmem:[#allocation5 + $0x30] sm:$0xff] }
  0xfe   : > { %391 = vst.msk [vmem:[%s1953_s1 + $0x28] sm:$0xff] %vm385_vm10, %v378_v50 }
  0xff   : > { %390 = vst.msk [vmem:[%s1953_s1 + $0x20] sm:$0xff] %vm385_vm10, %v377_v51  ;;  %v352_v56 = vpop.xlane.xlu1 %351 }
 0x100   : > { %v347_v33 = vpop.xlane.xlu0 %346  ;;  %v380_v46 = vadd.f32 %v352_v56, %v308_v52 }
 0x101   : > { %v379_v47 = vadd.f32 %v347_v33, %v307_v58 }
 0x102   : > { %393 = vst.msk [vmem:[%s1953_s1 + $0x38] sm:$0xff] %vm385_vm10, %v380_v46  ;;  %v405_v46 = vld [vmem:[#allocation5 + $0x38] sm:$0xff] }
 0x103   : > { %392 = vst.msk [vmem:[%s1953_s1 + $0x30] sm:$0xff] %vm385_vm10, %v379_v47  ;;  %v362_v15 = vpop.xlane.xlu1 %361 }
 0x104   : > { %v357_v36 = vpop.xlane.xlu0 %356  ;;  %v382_v42 = vadd.f32 %v362_v15, %v310_v38 }
 0x105   : > { %v381_v45 = vadd.f32 %v357_v36, %v309_v26 }
 0x106   : > { %395 = vst.msk [vmem:[%s1953_s1 + $0x48] sm:$0xff] %vm385_vm10, %v382_v42 }
 0x107   : > { %394 = vst.msk [vmem:[%s1953_s1 + $0x40] sm:$0xff] %vm385_vm10, %v381_v45  ;;  %v372_v25 = vpop.xlane.xlu1 %371  ;;  %v406_v45 = vld [vmem:[#allocation5 + $0x40] sm:$0xff] }
 0x108   : > { %v367_v29 = vpop.xlane.xlu0 %366  ;;  %v384_v53 = vadd.f32 %v372_v25, %v312_v9 }
 0x109   : > { %v383_v49 = vadd.f32 %v367_v29, %v311_v61 }
 0x10a   : > { %397 = vst.msk [vmem:[%s1953_s1 + $0x58] sm:$0xff] %vm385_vm10, %v384_v53 }
 0x10b   : > { %396 = vst.msk [vmem:[%s1953_s1 + $0x50] sm:$0xff] %vm385_vm10, %v383_v49 }
 0x162   : > { %v476_v6 = vpop.f32.mrb[0].mxu0 }
 0x163   : > { %v601_v41 = vpop.f32.mrb[0].mxu1  ;;  %v478_v31 = vpop.f32.mrb[1].mxu0 }
 0x164   : > { %v602_v54 = vadd.f32 %v601_v41, %v476_v6  ;;  %v603_v48 = vpop.f32.mrb[1].mxu1  ;;  %v407_v6 = vld [vmem:[#allocation5 + $0x48] sm:$0xff] }
 0x166   : > { %v660_v59 = vadd.f32 %v602_v54, %v398_v63  ;;  %v481_v60 = vpop.f32.mrb[2].mxu0 }
 0x167   : > { %v606_v16 = vpop.f32.mrb[2].mxu1  ;;  %v483_v5 = vpop.f32.mrb[3].mxu0 }
 0x168   : > { %673 = vst.msk [vmem:[#allocation5] sm:$0xff] %vm672_vm11, %v660_v59  ;;  %v607_v2 = vadd.f32 %v606_v16, %v481_v60  ;;  %v608_v55 = vpop.f32.mrb[3].mxu1  ;;  %v408_v60 = vld [vmem:[#allocation5 + $0x50] sm:$0xff] }
 0x16a   : > { %v661_v1 = vadd.f32 %v607_v2, %v399_v3  ;;  %v486_v57 = vpop.f32.mrb[4].mxu0 }
 0x16b   : > { %v611_v0 = vpop.f32.mrb[4].mxu1  ;;  %v488_v27 = vpop.f32.mrb[5].mxu0 }
 0x16c   : > { %674 = vst.msk [vmem:[#allocation5 + $0x8] sm:$0xff] %vm672_vm11, %v661_v1  ;;  %v612_v10 = vadd.f32 %v611_v0, %v486_v57  ;;  %v613_v4 = vpop.f32.mrb[5].mxu1  ;;  %v409_v57 = vld [vmem:[#allocation5 + $0x58] sm:$0xff] }
 0x16e   : > { %v662_v7 = vadd.f32 %v612_v10, %v400_v62  ;;  %v491_v8 = vpop.f32.mrb[6].mxu0 }
 0x16f   : > { %v616_v13 = vpop.f32.mrb[6].mxu1  ;;  %v493_v14 = vpop.f32.mrb[7].mxu0 }
 0x170   : > { %675 = vst.msk [vmem:[#allocation5 + $0x10] sm:$0xff] %vm672_vm11, %v662_v7  ;;  %v617_v17 = vadd.f32 %v616_v13, %v491_v8  ;;  %v618_v18 = vpop.f32.mrb[7].mxu1 }
 0x172   : > { %v663_v22 = vadd.f32 %v617_v17, %v401_v11  ;;  %v496_v23 = vpop.f32.mrb[8].mxu0 }
 0x173   : > { %v621_v19 = vpop.f32.mrb[8].mxu1  ;;  %v498_v28 = vpop.f32.mrb[9].mxu0 }
 0x174   : > { %676 = vst.msk [vmem:[#allocation5 + $0x18] sm:$0xff] %vm672_vm11, %v663_v22  ;;  %v622_v20 = vadd.f32 %v621_v19, %v496_v23  ;;  %v623_v30 = vpop.f32.mrb[9].mxu1 }
 0x176   : > { %v664_v12 = vadd.f32 %v622_v20, %v402_v24  ;;  %v501_v21 = vpop.f32.mrb[10].mxu0 }
 0x177   : > { %v626_v34 = vpop.f32.mrb[10].mxu1  ;;  %v503_v35 = vpop.f32.mrb[11].mxu0 }
 0x178   : > { %677 = vst.msk [vmem:[#allocation5 + $0x20] sm:$0xff] %vm672_vm11, %v664_v12  ;;  %v627_v37 = vadd.f32 %v626_v34, %v501_v21  ;;  %v628_v39 = vpop.f32.mrb[11].mxu1 }
 0x17a   : > { %v665_v40 = vadd.f32 %v627_v37, %v403_v32  ;;  %v506_v43 = vpop.f32.mrb[12].mxu0 }
 0x17b   : > { %v631_v50 = vpop.f32.mrb[12].mxu1  ;;  %v508_v51 = vpop.f32.mrb[13].mxu0 }
 0x17c   : > { %678 = vst.msk [vmem:[#allocation5 + $0x28] sm:$0xff] %vm672_vm11, %v665_v40  ;;  %v632_v52 = vadd.f32 %v631_v50, %v506_v43  ;;  %v633_v56 = vpop.f32.mrb[13].mxu1 }
 0x17e   : > { %v666_v58 = vadd.f32 %v632_v52, %v404_v44  ;;  %v511_v33 = vpop.f32.mrb[14].mxu0 }
 0x17f   : > { %v636_v47 = vpop.f32.mrb[14].mxu1  ;;  %v513_v38 = vpop.f32.mrb[15].mxu0 }
 0x180   : > { %679 = vst.msk [vmem:[#allocation5 + $0x30] sm:$0xff] %vm672_vm11, %v666_v58  ;;  %v637_v15 = vadd.f32 %v636_v47, %v511_v33  ;;  %v638_v26 = vpop.f32.mrb[15].mxu1 }
 0x182   : > { %v667_v36 = vadd.f32 %v637_v15, %v405_v46  ;;  %v516_v42 = vpop.f32.mrb[16].mxu0 }
 0x183   : > { %v641_v9 = vpop.f32.mrb[16].mxu1  ;;  %v518_v25 = vpop.f32.mrb[17].mxu0 }
 0x184   : > { %680 = vst.msk [vmem:[#allocation5 + $0x38] sm:$0xff] %vm672_vm11, %v667_v36  ;;  %v642_v61 = vadd.f32 %v641_v9, %v516_v42  ;;  %v643_v29 = vpop.f32.mrb[17].mxu1 }
 0x186   : > { %v668_v53 = vadd.f32 %v642_v61, %v406_v45  ;;  %v521_v49 = vpop.f32.mrb[18].mxu0 }
 0x187   : > { %v646_v63 = vpop.f32.mrb[18].mxu1  ;;  %v523_v41 = vpop.f32.mrb[19].mxu0 }
 0x188   : > { %681 = vst.msk [vmem:[#allocation5 + $0x40] sm:$0xff] %vm672_vm11, %v668_v53  ;;  %v647_v31 = vadd.f32 %v646_v63, %v521_v49  ;;  %v648_v54 = vpop.f32.mrb[19].mxu1 }
 0x18a   : > { %v669_v48 = vadd.f32 %v647_v31, %v407_v6  ;;  %v526_v59 = vpop.f32.mrb[20].mxu0 }
 0x18b   : > { %v651_v3 = vpop.f32.mrb[20].mxu1  ;;  %v528_v16 = vpop.f32.mrb[21].mxu0 }
 0x18c   : > { %682 = vst.msk [vmem:[#allocation5 + $0x48] sm:$0xff] %vm672_vm11, %v669_v48  ;;  %v652_v5 = vadd.f32 %v651_v3, %v526_v59  ;;  %v653_v2 = vpop.f32.mrb[21].mxu1 }
 0x18e   : > { %v670_v55 = vadd.f32 %v652_v5, %v408_v60  ;;  %v531_v1 = vpop.f32.mrb[22].mxu0 }
 0x18f   : > { %v656_v62 = vpop.f32.mrb[22].mxu1  ;;  %v533_v0 = vpop.f32.mrb[23].mxu0 }
 0x190   : > { %683 = vst.msk [vmem:[#allocation5 + $0x50] sm:$0xff] %vm672_vm11, %v670_v55  ;;  %v657_v27 = vadd.f32 %v656_v62, %v531_v1  ;;  %v658_v10 = vpop.f32.mrb[23].mxu1 }
 0x192   : > { %v671_v4 = vadd.f32 %v657_v27, %v409_v57 }
 0x194   : > { %684 = vst.msk [vmem:[#allocation5 + $0x58] sm:$0xff] %vm672_vm11, %v671_v4 }
 0x195   : > { %1023 = shalt.err (!%p1020_p11)
}
 0x196   : > { %s1024_s7 = scalar_lea.hbm %s1954_s2, 1536 }
 0x197   : > { %p1025_p13 = scmp.ne.s32.totalorder %s1954_s2, %s1024_s7  ;;  %p1030_p1 = scmp.lt.u32.totalorder %s1024_s7, %s1954_s2 }
 0x199   : > { %p1026_p0 = pnand %p1025_p13, %p942_p6 }
 0x19b   : > { %p1027_p12 = pneg %p1026_p0 }
 0x19d   : > { %p1032_p2 = pnand %p1030_p1, %p1027_p12 }
 0x19f   : > { %1035 = shalt.err (!%p1032_p2)
}
 0x1a0   : > { %s1081_s19 = smov 128   ;;  %s1082_s20 = smov 8  }
 0x1a1   : > { %939 = dma.vmem_to_hbm [thread:$0]  (%p942_p6), %s695_s3, 1536, %s1954_s2, [#allocation4], %s1081_s19, %s1081_s19, %s1082_s20  }
 0x1a2   : > { %1057 = dma.done.wait (%p942_p6), [#allocation4], 1536  }
 0x1a3   : > { %1059 = vsyncadd (%p942_p6), [#allocation4], 4294965760 }
 0x1a4 PF: > { %p14_p9 = scmp.ge.s32.totalorder %s1120_s14, 4   ;;  %s1992_s9 = smov %s1066_s10 }
 0x1a5   : > { %s1993_s10 = smov %s1070_s11  ;;  %s1994_s11 = smov %s1130_s17 }
 0x1a6   : > { %s1995_s12 = smov %s1120_s14  ;;  %16 = sbr.rel (!%p14_p9) target bundleno = 4 (0x4), region = 73 }
 0x1ad   :  { %713 = vsyncpa [#allocation3], 1 }
 0x1ae   :  { %715 = vsyncpa [#allocation3 + $0x1], 1 }
 0x1af   :  { %716 = vsyncpa [#allocation4], 1 }
 0x1b0   :  { %718 = vsyncpa [#allocation4 + $0x1], 1 }

</bundles_post_ra>
